<compile_context>
chip_gen: v5e
topology: v5e:2x2
jax: 0.10.0
libtpu: 0.0.40
codegen_flags: <defaults>
</compile_context>

<pallas_src>
import math

import jax
import jax.numpy as jnp
from jax.experimental import pallas as pl
from jax.experimental.pallas import tpu as pltpu

# ---------------- config (small shapes implied by the module) -----------------
B, T = 2, 8
HIDDEN = 32
NUM_HEADS = 4
DK = HIDDEN // NUM_HEADS
NEG_INF = -1.0e9            # matches masked_fill(-1000000000.0)


# ---------------- Pallas kernel ------------------------------------------------
def mha_kernel(x_ref, mask_ref, wqkv_ref, bqkv_ref, wo_ref, bo_ref, o_ref):
    # x_ref: (B*T, H)   mask_ref: (B, T, T) int32   wqkv_ref: (H, 3H)
    # bqkv_ref: (1, 3H) wo_ref: (H, H)              bo_ref: (1, H)
    # o_ref: (B*T, H)
    xf = x_ref[...]                                                   # (16, 32)

    # Fused QKV projection: one lane-dense (16,32)@(32,96) MXU op.
    # The 1/sqrt(dk) attention scale is already folded into the Q columns.
    qkv = (jnp.dot(xf, wqkv_ref[...], preferred_element_type=jnp.float32)
           + bqkv_ref[...])                                           # (16, 96)

    # Split into per-(head, batch) groups g = h*B + b using only static lane /
    # sublane slices and a leading-axis stack (no lane-dim reshapes needed).
    def groups(col_off):
        parts = []
        for h in range(NUM_HEADS):
            col = qkv[:, col_off + h * DK: col_off + (h + 1) * DK]    # (B*T, DK)
            for b in range(B):
                parts.append(col[b * T:(b + 1) * T, :])               # (T, DK)
        return jnp.stack(parts, axis=0)                               # (G, T, DK)

    q = groups(0)                                                     # (8, 8, 8)
    k = groups(HIDDEN)
    v = groups(2 * HIDDEN)

    # Scaled-dot-product attention for all (head, batch) groups at once.
    s = jnp.einsum("gqd,gkd->gqk", q, k,
                   preferred_element_type=jnp.float32)                # (G, T, T)

    # Broadcast the (B,T,T) mask across heads in-register (g = h*B + b ordering).
    maskg = jnp.concatenate([mask_ref[...]] * NUM_HEADS, axis=0)      # (G, T, T)
    s = jnp.where(maskg != 0, s, NEG_INF)                             # masked_fill(mask==0)

    # Numerically stable softmax with EXACT division (tight match to reference).
    s = s - jnp.max(s, axis=-1, keepdims=True)
    p = jnp.exp(s)
    p = p / jnp.sum(p, axis=-1, keepdims=True)
    # TODO(synk): attention dropout is identity in eval mode (not implemented).

    a = jnp.einsum("gqk,gkd->gqd", p, v,
                   preferred_element_type=jnp.float32)                # (G, T, DK)

    # Reassemble heads into a single (B*T, H) slab (cheap in-VMEM concat ops),
    # then ONE (16,32)@(32,32) output projection.
    cols = []
    for h in range(NUM_HEADS):
        col = jnp.concatenate([a[h * B + b] for b in range(B)], axis=0)   # (B*T, DK)
        cols.append(col)
    attn = jnp.concatenate(cols, axis=-1)                                 # (B*T, H)

    o_ref[...] = (jnp.dot(attn, wo_ref[...], preferred_element_type=jnp.float32)
                  + bo_ref[...])


# ---------------- one-time parameter prep (constant folding) -------------------
def prepare_params(params):
    """Fuse Q/K/V weights into (H, 3H) and fold 1/sqrt(dk) into the Q projection.
    Done once, outside the per-call path."""
    wq, bq, wk, bk, wv, bv, wo, bo = params
    scale = 1.0 / math.sqrt(DK)
    wqkv = jnp.concatenate([wq * scale, wk, wv], axis=1)      # (H, 3H)
    bqkv = jnp.concatenate([bq * scale, bk, bv], axis=1)      # (1, 3H)
    return wqkv, bqkv, wo, bo


# ---------------- wrapper -------------------------------------------------------
def mha_forward(x, mask, prepared):
    wqkv, bqkv, wo, bo = prepared
    bsz, seq, hid = x.shape
    vmem = pl.BlockSpec(memory_space=pltpu.MemorySpace.VMEM)
    out = pl.pallas_call(
        mha_kernel,
        out_shape=jax.ShapeDtypeStruct((bsz * seq, hid), jnp.float32),
        in_specs=[vmem, vmem, vmem, vmem, vmem, vmem],
        out_specs=vmem,
    )(x.reshape(bsz * seq, hid), mask, wqkv, bqkv, wo, bo)
    return out.reshape(bsz, seq, hid)


# ---------------- pure-JAX reference (for correctness check) -------------------
def mha_reference(x, mask, params):
    wq, bq, wk, bk, wv, bv, wo, bo = params
    bsz, seq, hid = x.shape

    def proj(w, b):
        return jnp.einsum("btd,dk->btk", x, w) + b[0]

    def heads(a):
        return a.reshape(bsz, seq, NUM_HEADS, DK).transpose(0, 2, 1, 3)

    qh, kh, vh = heads(proj(wq, bq)), heads(proj(wk, bk)), heads(proj(wv, bv))
    s = jnp.einsum("bhqd,bhkd->bhqk", qh, kh) / math.sqrt(DK)
    s = jnp.where(mask[:, None, :, :] != 0, s, NEG_INF)
    p = jax.nn.softmax(s, axis=-1)
    o = jnp.einsum("bhqk,bhkd->bhqd", p, vh)
    o = o.transpose(0, 2, 1, 3).reshape(bsz, seq, hid)
    return jnp.einsum("btd,dh->bth", o, wo) + bo[0]


# ---------------- main ----------------------------------------------------------
if __name__ == "__main__":
    key = jax.random.PRNGKey(0)
    kx, *kw = jax.random.split(key, 10)

    def linear(kw_, kb_, in_dim, out_dim):
        bound = 1.0 / math.sqrt(in_dim)
        w = jax.random.uniform(kw_, (in_dim, out_dim), jnp.float32, -bound, bound)
        b = jax.random.uniform(kb_, (1, out_dim), jnp.float32, -bound, bound)
        return w, b

    wq, bq = linear(kw[0], kw[1], HIDDEN, HIDDEN)
    wk, bk = linear(kw[2], kw[3], HIDDEN, HIDDEN)
    wv, bv = linear(kw[4], kw[5], HIDDEN, HIDDEN)
    wo, bo = linear(kw[6], kw[7], HIDDEN, HIDDEN)
    params = (wq, bq, wk, bk, wv, bv, wo, bo)
    prepared = prepare_params(params)          # one-time constant fold

    x = jax.random.normal(kx, (B, T, HIDDEN), jnp.float32)
    causal = jnp.tril(jnp.ones((T, T), jnp.int32))
    mask = jnp.tile(causal[None, :, :], (B, 1, 1))           # (B, T, T), 0 = masked

    fwd = jax.jit(mha_forward)
    out = jax.block_until_ready(fwd(x, mask, prepared))
    assert out.shape == (B, T, HIDDEN) and out.dtype == jnp.float32

    ref = jax.block_until_ready(mha_reference(x, mask, params))
    # f32 throughout + exact softmax division -> tight tolerance
    assert jnp.allclose(out, ref, atol=1e-4, rtol=1e-4), (
        f"Pallas/JAX mismatch, max abs err = {jnp.max(jnp.abs(out - ref))}")

    print("KERNEL_OK")
</pallas_src>

<mosaic_0001>
module attributes {stable_mosaic.version = 11 : i64} {
  func.func @mha_kernel(%arg0: memref<16x32xf32, #tpu.memory_space<vmem>>, %arg1: memref<2x8x8xi32, #tpu.memory_space<vmem>>, %arg2: memref<32x96xf32, #tpu.memory_space<vmem>>, %arg3: memref<1x96xf32, #tpu.memory_space<vmem>>, %arg4: memref<32x32xf32, #tpu.memory_space<vmem>>, %arg5: memref<1x32xf32, #tpu.memory_space<vmem>>, %arg6: memref<16x32xf32, #tpu.memory_space<vmem>>) attributes {dimension_semantics = [], scalar_prefetch = 0 : i64, scratch_operands = 0 : i64, tpu.core_type = #tpu.core_type<tc>} {
    %c0 = arith.constant 0 : index
    %c0_0 = arith.constant 0 : index
    %0 = vector.load %arg0[%c0, %c0_0] : memref<16x32xf32, #tpu.memory_space<vmem>>, vector<16x32xf32>
    %c0_1 = arith.constant 0 : index
    %c0_2 = arith.constant 0 : index
    %1 = vector.load %arg2[%c0_1, %c0_2] : memref<32x96xf32, #tpu.memory_space<vmem>>, vector<32x96xf32>
    %cst = arith.constant dense<0.000000e+00> : vector<16x96xf32>
    %2 = tpu.matmul %0, %1, %cst {dimension_numbers = #tpu.dot_dimension_numbers<[1], [0], [0], [1], [0, 0, 1, 1], [], []>} : vector<16x32xf32>, vector<32x96xf32>, vector<16x96xf32> -> vector<16x96xf32>
    %c0_3 = arith.constant 0 : index
    %c0_4 = arith.constant 0 : index
    %3 = vector.load %arg3[%c0_3, %c0_4] : memref<1x96xf32, #tpu.memory_space<vmem>>, vector<1x96xf32>
    %4 = vector.broadcast %3 : vector<1x96xf32> to vector<16x96xf32>
    %5 = arith.addf %2, %4 : vector<16x96xf32>
    %6 = vector.extract_strided_slice %5 {offsets = [0, 0], sizes = [16, 8], strides = [1, 1]} : vector<16x96xf32> to vector<16x8xf32>
    %7 = vector.extract_strided_slice %6 {offsets = [0, 0], sizes = [8, 8], strides = [1, 1]} : vector<16x8xf32> to vector<8x8xf32>
    %8 = vector.extract_strided_slice %6 {offsets = [8, 0], sizes = [8, 8], strides = [1, 1]} : vector<16x8xf32> to vector<8x8xf32>
    %9 = vector.extract_strided_slice %5 {offsets = [0, 8], sizes = [16, 8], strides = [1, 1]} : vector<16x96xf32> to vector<16x8xf32>
    %10 = vector.extract_strided_slice %9 {offsets = [0, 0], sizes = [8, 8], strides = [1, 1]} : vector<16x8xf32> to vector<8x8xf32>
    %11 = vector.extract_strided_slice %9 {offsets = [8, 0], sizes = [8, 8], strides = [1, 1]} : vector<16x8xf32> to vector<8x8xf32>
    %12 = vector.extract_strided_slice %5 {offsets = [0, 16], sizes = [16, 8], strides = [1, 1]} : vector<16x96xf32> to vector<16x8xf32>
    %13 = vector.extract_strided_slice %12 {offsets = [0, 0], sizes = [8, 8], strides = [1, 1]} : vector<16x8xf32> to vector<8x8xf32>
    %14 = vector.extract_strided_slice %12 {offsets = [8, 0], sizes = [8, 8], strides = [1, 1]} : vector<16x8xf32> to vector<8x8xf32>
    %15 = vector.extract_strided_slice %5 {offsets = [0, 24], sizes = [16, 8], strides = [1, 1]} : vector<16x96xf32> to vector<16x8xf32>
    %16 = vector.extract_strided_slice %15 {offsets = [0, 0], sizes = [8, 8], strides = [1, 1]} : vector<16x8xf32> to vector<8x8xf32>
    %17 = vector.extract_strided_slice %15 {offsets = [8, 0], sizes = [8, 8], strides = [1, 1]} : vector<16x8xf32> to vector<8x8xf32>
    %18 = vector.shape_cast %7 : vector<8x8xf32> to vector<1x8x8xf32>
    %19 = vector.shape_cast %8 : vector<8x8xf32> to vector<1x8x8xf32>
    %20 = vector.shape_cast %10 : vector<8x8xf32> to vector<1x8x8xf32>
    %21 = vector.shape_cast %11 : vector<8x8xf32> to vector<1x8x8xf32>
    %22 = vector.shape_cast %13 : vector<8x8xf32> to vector<1x8x8xf32>
    %23 = vector.shape_cast %14 : vector<8x8xf32> to vector<1x8x8xf32>
    %24 = vector.shape_cast %16 : vector<8x8xf32> to vector<1x8x8xf32>
    %25 = vector.shape_cast %17 : vector<8x8xf32> to vector<1x8x8xf32>
    %26 = tpu.concatenate %18, %19, %20, %21, %22, %23, %24, %25 in 0 : vector<1x8x8xf32>, vector<1x8x8xf32>, vector<1x8x8xf32>, vector<1x8x8xf32>, vector<1x8x8xf32>, vector<1x8x8xf32>, vector<1x8x8xf32>, vector<1x8x8xf32> -> vector<8x8x8xf32>
    %27 = vector.extract_strided_slice %5 {offsets = [0, 32], sizes = [16, 8], strides = [1, 1]} : vector<16x96xf32> to vector<16x8xf32>
    %28 = vector.extract_strided_slice %27 {offsets = [0, 0], sizes = [8, 8], strides = [1, 1]} : vector<16x8xf32> to vector<8x8xf32>
    %29 = vector.extract_strided_slice %27 {offsets = [8, 0], sizes = [8, 8], strides = [1, 1]} : vector<16x8xf32> to vector<8x8xf32>
    %30 = vector.extract_strided_slice %5 {offsets = [0, 40], sizes = [16, 8], strides = [1, 1]} : vector<16x96xf32> to vector<16x8xf32>
    %31 = vector.extract_strided_slice %30 {offsets = [0, 0], sizes = [8, 8], strides = [1, 1]} : vector<16x8xf32> to vector<8x8xf32>
    %32 = vector.extract_strided_slice %30 {offsets = [8, 0], sizes = [8, 8], strides = [1, 1]} : vector<16x8xf32> to vector<8x8xf32>
    %33 = vector.extract_strided_slice %5 {offsets = [0, 48], sizes = [16, 8], strides = [1, 1]} : vector<16x96xf32> to vector<16x8xf32>
    %34 = vector.extract_strided_slice %33 {offsets = [0, 0], sizes = [8, 8], strides = [1, 1]} : vector<16x8xf32> to vector<8x8xf32>
    %35 = vector.extract_strided_slice %33 {offsets = [8, 0], sizes = [8, 8], strides = [1, 1]} : vector<16x8xf32> to vector<8x8xf32>
    %36 = vector.extract_strided_slice %5 {offsets = [0, 56], sizes = [16, 8], strides = [1, 1]} : vector<16x96xf32> to vector<16x8xf32>
    %37 = vector.extract_strided_slice %36 {offsets = [0, 0], sizes = [8, 8], strides = [1, 1]} : vector<16x8xf32> to vector<8x8xf32>
    %38 = vector.extract_strided_slice %36 {offsets = [8, 0], sizes = [8, 8], strides = [1, 1]} : vector<16x8xf32> to vector<8x8xf32>
    %39 = vector.shape_cast %28 : vector<8x8xf32> to vector<1x8x8xf32>
    %40 = vector.shape_cast %29 : vector<8x8xf32> to vector<1x8x8xf32>
    %41 = vector.shape_cast %31 : vector<8x8xf32> to vector<1x8x8xf32>
    %42 = vector.shape_cast %32 : vector<8x8xf32> to vector<1x8x8xf32>
    %43 = vector.shape_cast %34 : vector<8x8xf32> to vector<1x8x8xf32>
    %44 = vector.shape_cast %35 : vector<8x8xf32> to vector<1x8x8xf32>
    %45 = vector.shape_cast %37 : vector<8x8xf32> to vector<1x8x8xf32>
    %46 = vector.shape_cast %38 : vector<8x8xf32> to vector<1x8x8xf32>
    %47 = tpu.concatenate %39, %40, %41, %42, %43, %44, %45, %46 in 0 : vector<1x8x8xf32>, vector<1x8x8xf32>, vector<1x8x8xf32>, vector<1x8x8xf32>, vector<1x8x8xf32>, vector<1x8x8xf32>, vector<1x8x8xf32>, vector<1x8x8xf32> -> vector<8x8x8xf32>
    %48 = vector.extract_strided_slice %5 {offsets = [0, 64], sizes = [16, 8], strides = [1, 1]} : vector<16x96xf32> to vector<16x8xf32>
    %49 = vector.extract_strided_slice %48 {offsets = [0, 0], sizes = [8, 8], strides = [1, 1]} : vector<16x8xf32> to vector<8x8xf32>
    %50 = vector.extract_strided_slice %48 {offsets = [8, 0], sizes = [8, 8], strides = [1, 1]} : vector<16x8xf32> to vector<8x8xf32>
    %51 = vector.extract_strided_slice %5 {offsets = [0, 72], sizes = [16, 8], strides = [1, 1]} : vector<16x96xf32> to vector<16x8xf32>
    %52 = vector.extract_strided_slice %51 {offsets = [0, 0], sizes = [8, 8], strides = [1, 1]} : vector<16x8xf32> to vector<8x8xf32>
    %53 = vector.extract_strided_slice %51 {offsets = [8, 0], sizes = [8, 8], strides = [1, 1]} : vector<16x8xf32> to vector<8x8xf32>
    %54 = vector.extract_strided_slice %5 {offsets = [0, 80], sizes = [16, 8], strides = [1, 1]} : vector<16x96xf32> to vector<16x8xf32>
    %55 = vector.extract_strided_slice %54 {offsets = [0, 0], sizes = [8, 8], strides = [1, 1]} : vector<16x8xf32> to vector<8x8xf32>
    %56 = vector.extract_strided_slice %54 {offsets = [8, 0], sizes = [8, 8], strides = [1, 1]} : vector<16x8xf32> to vector<8x8xf32>
    %57 = vector.extract_strided_slice %5 {offsets = [0, 88], sizes = [16, 8], strides = [1, 1]} : vector<16x96xf32> to vector<16x8xf32>
    %58 = vector.extract_strided_slice %57 {offsets = [0, 0], sizes = [8, 8], strides = [1, 1]} : vector<16x8xf32> to vector<8x8xf32>
    %59 = vector.extract_strided_slice %57 {offsets = [8, 0], sizes = [8, 8], strides = [1, 1]} : vector<16x8xf32> to vector<8x8xf32>
    %60 = vector.shape_cast %49 : vector<8x8xf32> to vector<1x8x8xf32>
    %61 = vector.shape_cast %50 : vector<8x8xf32> to vector<1x8x8xf32>
    %62 = vector.shape_cast %52 : vector<8x8xf32> to vector<1x8x8xf32>
    %63 = vector.shape_cast %53 : vector<8x8xf32> to vector<1x8x8xf32>
    %64 = vector.shape_cast %55 : vector<8x8xf32> to vector<1x8x8xf32>
    %65 = vector.shape_cast %56 : vector<8x8xf32> to vector<1x8x8xf32>
    %66 = vector.shape_cast %58 : vector<8x8xf32> to vector<1x8x8xf32>
    %67 = vector.shape_cast %59 : vector<8x8xf32> to vector<1x8x8xf32>
    %68 = tpu.concatenate %60, %61, %62, %63, %64, %65, %66, %67 in 0 : vector<1x8x8xf32>, vector<1x8x8xf32>, vector<1x8x8xf32>, vector<1x8x8xf32>, vector<1x8x8xf32>, vector<1x8x8xf32>, vector<1x8x8xf32>, vector<1x8x8xf32> -> vector<8x8x8xf32>
    "tpu.trace_start"() <{level = 10 : i32, message = "gqd,gkd->gqk"}> : () -> ()
    %cst_5 = arith.constant dense<0.000000e+00> : vector<8x8x8xf32>
    %69 = tpu.matmul %26, %47, %cst_5 {dimension_numbers = #tpu.dot_dimension_numbers<[2], [2], [1], [1], [0, 0, 0, 1, 1, 1], [0], [0]>} : vector<8x8x8xf32>, vector<8x8x8xf32>, vector<8x8x8xf32> -> vector<8x8x8xf32>
    "tpu.trace_stop"() : () -> ()
    %c0_6 = arith.constant 0 : index
    %c0_7 = arith.constant 0 : index
    %c0_8 = arith.constant 0 : index
    %70 = vector.load %arg1[%c0_6, %c0_7, %c0_8] : memref<2x8x8xi32, #tpu.memory_space<vmem>>, vector<2x8x8xi32>
    %71 = tpu.concatenate %70, %70, %70, %70 in 0 : vector<2x8x8xi32>, vector<2x8x8xi32>, vector<2x8x8xi32>, vector<2x8x8xi32> -> vector<8x8x8xi32>
    %c0_i32 = arith.constant 0 : i32
    %72 = vector.broadcast %c0_i32 : i32 to vector<8x8x8xi32>
    %73 = arith.cmpi ne, %71, %72 : vector<8x8x8xi32>
    %cst_9 = arith.constant -1.000000e+09 : f32
    %74 = vector.broadcast %cst_9 : f32 to vector<8x8x8xf32>
    %75 = arith.select %73, %69, %74 : vector<8x8x8xi1>, vector<8x8x8xf32>
    %cst_10 = arith.constant dense<0xFF800000> : vector<8x8xf32>
    %76 = vector.multi_reduction <maximumf>, %75, %cst_10 [2] : vector<8x8x8xf32> to vector<8x8xf32>
    %77 = vector.shape_cast %76 : vector<8x8xf32> to vector<8x8x1xf32>
    %78 = vector.broadcast %77 : vector<8x8x1xf32> to vector<8x8x8xf32>
    %79 = arith.subf %75, %78 : vector<8x8x8xf32>
    %80 = math.exp %79 : vector<8x8x8xf32>
    %cst_11 = arith.constant dense<0.000000e+00> : vector<8x8xf32>
    %81 = vector.multi_reduction <add>, %80, %cst_11 [2] : vector<8x8x8xf32> to vector<8x8xf32>
    %82 = vector.shape_cast %81 : vector<8x8xf32> to vector<8x8x1xf32>
    %83 = vector.broadcast %82 : vector<8x8x1xf32> to vector<8x8x8xf32>
    %84 = arith.divf %80, %83 : vector<8x8x8xf32>
    "tpu.trace_start"() <{level = 10 : i32, message = "gqk,gkd->gqd"}> : () -> ()
    %cst_12 = arith.constant dense<0.000000e+00> : vector<8x8x8xf32>
    %85 = tpu.matmul %84, %68, %cst_12 {dimension_numbers = #tpu.dot_dimension_numbers<[2], [1], [1], [2], [0, 0, 0, 1, 1, 2], [0], [0]>} : vector<8x8x8xf32>, vector<8x8x8xf32>, vector<8x8x8xf32> -> vector<8x8x8xf32>
    "tpu.trace_stop"() : () -> ()
    %86 = vector.extract_strided_slice %85 {offsets = [0, 0, 0], sizes = [1, 8, 8], strides = [1, 1, 1]} : vector<8x8x8xf32> to vector<1x8x8xf32>
    %87 = vector.shape_cast %86 : vector<1x8x8xf32> to vector<8x8xf32>
    %88 = vector.extract_strided_slice %85 {offsets = [1, 0, 0], sizes = [1, 8, 8], strides = [1, 1, 1]} : vector<8x8x8xf32> to vector<1x8x8xf32>
    %89 = vector.shape_cast %88 : vector<1x8x8xf32> to vector<8x8xf32>
    %90 = tpu.concatenate %87, %89 in 0 : vector<8x8xf32>, vector<8x8xf32> -> vector<16x8xf32>
    %91 = vector.extract_strided_slice %85 {offsets = [2, 0, 0], sizes = [1, 8, 8], strides = [1, 1, 1]} : vector<8x8x8xf32> to vector<1x8x8xf32>
    %92 = vector.shape_cast %91 : vector<1x8x8xf32> to vector<8x8xf32>
    %93 = vector.extract_strided_slice %85 {offsets = [3, 0, 0], sizes = [1, 8, 8], strides = [1, 1, 1]} : vector<8x8x8xf32> to vector<1x8x8xf32>
    %94 = vector.shape_cast %93 : vector<1x8x8xf32> to vector<8x8xf32>
    %95 = tpu.concatenate %92, %94 in 0 : vector<8x8xf32>, vector<8x8xf32> -> vector<16x8xf32>
    %96 = vector.extract_strided_slice %85 {offsets = [4, 0, 0], sizes = [1, 8, 8], strides = [1, 1, 1]} : vector<8x8x8xf32> to vector<1x8x8xf32>
    %97 = vector.shape_cast %96 : vector<1x8x8xf32> to vector<8x8xf32>
    %98 = vector.extract_strided_slice %85 {offsets = [5, 0, 0], sizes = [1, 8, 8], strides = [1, 1, 1]} : vector<8x8x8xf32> to vector<1x8x8xf32>
    %99 = vector.shape_cast %98 : vector<1x8x8xf32> to vector<8x8xf32>
    %100 = tpu.concatenate %97, %99 in 0 : vector<8x8xf32>, vector<8x8xf32> -> vector<16x8xf32>
    %101 = vector.extract_strided_slice %85 {offsets = [6, 0, 0], sizes = [1, 8, 8], strides = [1, 1, 1]} : vector<8x8x8xf32> to vector<1x8x8xf32>
    %102 = vector.shape_cast %101 : vector<1x8x8xf32> to vector<8x8xf32>
    %103 = vector.extract_strided_slice %85 {offsets = [7, 0, 0], sizes = [1, 8, 8], strides = [1, 1, 1]} : vector<8x8x8xf32> to vector<1x8x8xf32>
    %104 = vector.shape_cast %103 : vector<1x8x8xf32> to vector<8x8xf32>
    %105 = tpu.concatenate %102, %104 in 0 : vector<8x8xf32>, vector<8x8xf32> -> vector<16x8xf32>
    %106 = tpu.concatenate %90, %95, %100, %105 in 1 : vector<16x8xf32>, vector<16x8xf32>, vector<16x8xf32>, vector<16x8xf32> -> vector<16x32xf32>
    %c0_13 = arith.constant 0 : index
    %c0_14 = arith.constant 0 : index
    %107 = vector.load %arg4[%c0_13, %c0_14] : memref<32x32xf32, #tpu.memory_space<vmem>>, vector<32x32xf32>
    %cst_15 = arith.constant dense<0.000000e+00> : vector<16x32xf32>
    %108 = tpu.matmul %106, %107, %cst_15 {dimension_numbers = #tpu.dot_dimension_numbers<[1], [0], [0], [1], [0, 0, 1, 1], [], []>} : vector<16x32xf32>, vector<32x32xf32>, vector<16x32xf32> -> vector<16x32xf32>
    %c0_16 = arith.constant 0 : index
    %c0_17 = arith.constant 0 : index
    %109 = vector.load %arg5[%c0_16, %c0_17] : memref<1x32xf32, #tpu.memory_space<vmem>>, vector<1x32xf32>
    %110 = vector.broadcast %109 : vector<1x32xf32> to vector<16x32xf32>
    %111 = arith.addf %108, %110 : vector<16x32xf32>
    %c0_18 = arith.constant 0 : index
    %c0_19 = arith.constant 0 : index
    %112 = vector.load %arg6[%c0_18, %c0_19] : memref<16x32xf32, #tpu.memory_space<vmem>>, vector<16x32xf32>
    tpu.vector_store %arg6[%c0_18, %c0_19], %111 {strides = array<i32>} : memref<16x32xf32, #tpu.memory_space<vmem>>, vector<16x32xf32>,
    return
  }
}

</mosaic_0001>

<bundles_post_ra>
// kernel: mha_forward.1
= control target key start
LH: loop header
LB: loop body
LE: loop exit
PB: predicated region body
PF: predicated region fallthrough
CT: control target
= control target key end

     0   :  { %11 = vsyncpa [#allocation3], 0  ;;  %s1332_s0 = inlined_call_operand.hbm [shape: f32[16,32], index: 0, kind: input, shape index: {}]   ;;  %s1333_s1 = inlined_call_operand.hbm [shape: s32[2,8,8], index: 1, kind: input, shape index: {}]   ;;  %s1334_s2 = inlined_call_operand.hbm [shape: f32[32,96], index: 2, kind: input, shape index: {}]   ;;  %s1335_s3 = inlined_call_operand.vmem [shape: f32[1,96], index: 3, kind: input, shape index: {}]   ;;  %s1336_s4 = inlined_call_operand.hbm [shape: f32[32,32], index: 4, kind: input, shape index: {}]   ;;  %s1337_s5 = inlined_call_operand.vmem [shape: f32[1,32], index: 5, kind: input, shape index: {}]   ;;  %s1338_s6 = inlined_call_operand.hbm [shape: f32[16,32], index: 6, kind: output, shape index: {}]  }
   0x1   :  { %12 = vsyncpa [#allocation6], 0 }
   0x2   :  { %13 = vsyncpa [#allocation9], 0 }
   0x3   :  { %14 = vsyncpa [#allocation4], 0  ;;  %s32_s23 = sshll.u32 %s1333_s1, 4  ;;  %s1073_s24 = smov [#allocation5]   ;;  %s33_s23 = int_to_ptr.hbm [resolvable:$true] %s32_s23 }
   0x4   :  { %s34_s25 = sshll.u32 %s1073_s24, 4  ;;  %s19_s28 = sshll.u32 %s1332_s0, 4  ;;  %s35_s25 = int_to_ptr.vmem [resolvable:$true] %s34_s25  ;;  %s20_s28 = int_to_ptr.hbm [resolvable:$true] %s19_s28 }
   0x5   :  { %s1074_s29 = smov 128   ;;  %s1075_s30 = smov 8  }
   0x6   :  { %40 = dma.hbm_to_vmem [thread:$0]  %s33_s23, 256, %s35_s25, [#allocation6], %s1074_s29, %s1074_s29, %s1075_s30  }
   0x7   :  { %s1076_s7 = smov [#allocation2]   ;;  %s45_s1 = sshll.u32 %s1334_s2, 4  ;;  %s46_s1 = int_to_ptr.hbm [resolvable:$true] %s45_s1 }
   0x8   :  { %s21_s8 = sshll.u32 %s1076_s7, 4  ;;  %s60_s12 = sshll.u32 %s1336_s4, 4  ;;  %s22_s8 = int_to_ptr.vmem [resolvable:$true] %s21_s8  ;;  %s61_s12 = int_to_ptr.hbm [resolvable:$true] %s60_s12 }
   0x9   :  { %27 = dma.hbm_to_vmem [thread:$0]  %s20_s28, 256, %s22_s8, [#allocation3], %s1074_s29, %s1074_s29, %s1075_s30  }
   0xa   :  { %s1077_s13 = smov [#allocation7]   ;;  %s1078_s15 = smov [#allocation8]  }
   0xb   :  { %s47_s14 = sshll.u32 %s1077_s13, 4  ;;  %s62_s2 = sshll.u32 %s1078_s15, 4  ;;  %s48_s14 = int_to_ptr.vmem [resolvable:$true] %s47_s14  ;;  %s63_s2 = int_to_ptr.vmem [resolvable:$true] %s62_s2 }
   0xc   :  { %53 = dma.hbm_to_vmem [thread:$0]  %s46_s1, 512, %s48_s14, [#allocation6], %s1074_s29, %s1074_s29, %s1075_s30  }
   0xd   :  { %68 = dma.hbm_to_vmem [thread:$0]  %s61_s12, 512, %s63_s2, [#allocation9], %s1074_s29, %s1074_s29, %s1075_s30  }
   0xe   :  { %1065 = dma.done.wait [#allocation3], 256  }
   0xf   :  { %1066 = vsyncadd [#allocation3], 4294967040 }
  0x10   :  { %1067 = dma.done.wait [#allocation6], 768  }
  0x11   :  { %1068 = vsyncadd [#allocation6], 4294966528 }
  0x12   :  { %1069 = dma.done.wait [#allocation9], 512  }
  0x13   :  { %1070 = vsyncadd [#allocation9], 4294966784  ;;  %v92_v0 = vld [vmem:[#allocation7 + $0x18] sm:$0xff]  ;;  %v91_v1 = vld [vmem:[#allocation7 + $0x10] sm:$0xff]  ;;  %vm97_vm0 = vcmask 261120   ;;  %s1079_s17 = smov 104  }
  0x14   :  { %116 = vmatpush.msra.mxu0 %v92_v0  ;;  %v90_v2 = vld [vmem:[#allocation7 + $0x8] sm:$0xff]  ;;  %v89_v3 = vld [vmem:[#allocation7] sm:$0xff]  ;;  %s1080_s18 = smov 112   ;;  %s1081_s19 = smov 120   ;;  %vm143_vm1 = vcmask 64512   ;;  %v350_v25 = vld [vmem:[#allocation5] sm:$0xff] }
  0x15   :  { %v87_v4 = vld [vmem:[#allocation2] sm:$0xff]  ;;  %v88_v5 = vld [vmem:[#allocation2 + $0x8] sm:$0xff]  ;;  %vm352_vm2 = vcmp.ne.s32.totalorder %v350_v25, 0  ;;  %v351_v33 = vld [vmem:[#allocation5 + $0x8] sm:$0xff]  ;;  %s1083_s20 = smov 64   ;;  %s1084_s21 = smov 16  }
  0x16   :  { %117 = vmatpush.msra.mxu0 %v91_v1  ;;  %v911_v6 = vld [vmem:[%s1335_s3] ss:$0 sm:$0xff]  ;;  %s1082_s3 = smov 96   ;;  %vm353_vm3 = vcmp.ne.s32.totalorder %v351_v33, 0  ;;  %s1085_s22 = smov 24  }
  0x17   :  { %s1086_s25 = smov [#allocation10]   ;;  %s839_s7 = sshll.u32 %s1338_s6, 4  ;;  %s840_s7 = int_to_ptr.hbm [resolvable:$true] %s839_s7 }
  0x18   :  { %118 = vmatpush.msra.mxu0 %v90_v2  ;;  %s837_s26 = sshll.u32 %s1086_s25, 4  ;;  %s838_s26 = int_to_ptr.vmem [resolvable:$true] %s837_s26 }
  0x1a   :  { %119 = vmatpush.msra.mxu0 %v89_v3 }
  0x1b   :  { %854 = vmatmul.msk.f32.vlgmr.msra.gmra.mxu0 %vm97_vm0, %v87_v4 }
  0x23   :  { %855 = vmatmul.msk.f32.gmra.mxu0 %vm97_vm0, %v88_v5 }
  0x98   :  { %v121_v7 = vpop.f32.mrf.mxu0 }
  0x99   :  { %v1151_v8 = vadd.f32 %v911_v6, %v121_v7 }
  0x9b   :  { %137 = vrot.lane.b32.xlu2 %v1151_v8, %s1079_s17  ;;  %133 = vrot.lane.b32.xlu0 %v1151_v8, %s1080_s18 }
  0xa0   :  { %v124_v9 = vpop.f32.mrf.mxu0 }
  0xa1   :  { %v1155_v10 = vadd.f32 %v911_v6, %v124_v9 }
  0xa3   :  { %131 = vrot.lane.b32.xlu1 %v1155_v10, %s1081_s19  ;;  %135 = vrot.lane.b32.xlu2 %v1155_v10, %s1080_s18 }
  0xa4   :  { %128 = vrot.lane.b32.xlu0 %v1151_v8, %s1081_s19 }
  0xab   :  { %139 = vrot.lane.b32.xlu1 %v1155_v10, %s1079_s17 }
  0xac   :  { %168 = vrot.lane.b32.xlu0 %v1155_v10, %s1082_s3 }
  0xb3   :  { %141 = vrot.lane.b32.xlu1 %v1151_v8, %s1082_s3 }
  0xf5   :  { %v1166_v12 = vpop.permute.xlu2 %137 }
  0xfd   :  { %v1174_v15 = vpop.permute.xlu2 %135 }
 0x10d   :  { %v1163_v11 = vpop.permute.xlu0 %133 }
 0x10e   :  { %246 = vrot.lane.b32.xlu2 %v1163_v11, %s1082_s3 }
 0x115   :  { %v1168_v13 = vpop.permute.xlu1 %131 }
 0x116   :  { %v1170_v14 = vpop.permute.xlu0 %128  ;;  %220 = vrot.lane.b32.xlu1 %v1168_v13, %s1082_s3  ;;  %v901_v57 = vpack.i.bf16 %v1168_v13, %v1163_v11 }
 0x117   :  { %194 = vrot.lane.b32.xlu0 %v1170_v14, %s1082_s3  ;;  %v896_v47 = vpack.i.bf16 %v1170_v14, %v1151_v8 }
 0x11d   :  { %v1176_v16 = vpop.permute.xlu1 %139 }
 0x11e   :  { %v169_v17 = vpop.permute.xlu0 %168  ;;  %272 = vrot.lane.b32.xlu1 %v1174_v15, %s1082_s3  ;;  %324 = vrot.lane.b32.xlu2 %v1176_v16, %s1082_s3 }
 0x11f   :  { %298 = vrot.lane.b32.xlu0 %v1166_v12, %s1082_s3  ;;  %858 = vmatpush.xpose.msk.msra.mxu2 %vm143_vm1, %v169_v17 }
 0x122   :  { %859 = vmatmul.msk.f32.vlgmr.msra.gmra.mxu2 %vm143_vm1, %v1155_v10 }
 0x125   :  { %v142_v18 = vpop.permute.xlu1 %141 }
 0x126   :  { %856 = vmatpush.xpose.msk.msra.mxu1 %vm143_vm1, %v142_v18 }
 0x129   :  { %857 = vmatmul.msk.f32.vlgmr.msra.gmra.mxu1 %vm143_vm1, %v1151_v8 }
 0x168   :  { %v247_v19 = vpop.permute.xlu2 %246 }
 0x169   :  { %864 = vmatpush.xpose.msk.msrb.mxu2 %vm143_vm1, %v247_v19 }
 0x16c   :  { %865 = vmatmul.msk.f32.vlgmr.msrb.gmra.mxu2 %vm143_vm1, %v1163_v11 }
 0x178   :  { %v325_v20 = vpop.permute.xlu2 %324 }
 0x179   :  { %870 = vmatpush.xpose.msk.msra.mxu2 %vm143_vm1, %v325_v20 }
 0x17c   :  { %871 = vmatmul.msk.f32.vlgmr.msra.gmra.mxu2 %vm143_vm1, %v1176_v16 }
 0x188   :  { %v221_v21 = vpop.permute.xlu1 %220 }
 0x189   :  { %v195_v22 = vpop.permute.xlu0 %194  ;;  %862 = vmatpush.xpose.msk.msrb.mxu1 %vm143_vm1, %v221_v21 }
 0x18a   :  { %860 = vmatpush.xpose.msk.msrb.mxu0 %vm143_vm1, %v195_v22 }
 0x18c   :  { %863 = vmatmul.msk.f32.vlgmr.msrb.gmra.mxu1 %vm143_vm1, %v1168_v13 }
 0x18d   :  { %861 = vmatmul.msk.f32.vlgmr.msrb.gmra.mxu0 %vm143_vm1, %v1170_v14 }
 0x190   :  { %v273_v23 = vpop.permute.xlu1 %272 }
 0x191   :  { %v299_v24 = vpop.permute.xlu0 %298  ;;  %866 = vmatpush.xpose.msk.msra.mxu3 %vm143_vm1, %v273_v23 }
 0x192   :  { %868 = vmatpush.xpose.msk.msra.mxu1 %vm143_vm1, %v299_v24 }
 0x194   :  { %867 = vmatmul.msk.f32.vlgmr.msra.gmra.mxu3 %vm143_vm1, %v1174_v15 }
 0x195   :  { %869 = vmatmul.msk.f32.vlgmr.msra.gmra.mxu1 %vm143_vm1, %v1166_v12 }
 0x1a5   :  { %v191_v29 = vpop.f32.mrf.mxu2 }
 0x1a6   :  { %v165_v26 = vpop.f32.mrf.mxu1  ;;  %v355_v43 = vsel %vm353_vm3, %v191_v29, -1e+09 }
 0x1a7   :  { %v354_v27 = vsel %vm352_vm2, %v165_v26, -1e+09  ;;  %v365_v44 = vsel %vm143_vm1, %v355_v43, -inf }
 0x1a8   :  { %v362_v28 = vsel %vm143_vm1, %v354_v27, -inf }
 0x1a9   :  { %363 = vmax.xlane.f32.xlu2 %v362_v28 }
 0x1ef   :  { %v269_v30 = vpop.f32.mrf.mxu2 }
 0x1f0   :  { %v358_v31 = vsel %vm352_vm2, %v269_v30, -1e+09 }
 0x1f1   :  { %v374_v32 = vsel %vm143_vm1, %v358_v31, -inf }
 0x1f2   :  { %375 = vmax.xlane.f32.xlu1 %v374_v32 }
 0x1ff   :  { %v347_v34 = vpop.f32.mrf.mxu2 }
 0x200   :  { %v361_v35 = vsel %vm353_vm3, %v347_v34, -1e+09 }
 0x201   :  { %v383_v36 = vsel %vm143_vm1, %v361_v35, -inf }
 0x202   :  { %384 = vmax.xlane.f32.xlu1 %v383_v36 }
 0x209   :  { %v243_v37 = vpop.f32.mrf.mxu1 }
 0x20a   :  { %v217_v38 = vpop.f32.mrf.mxu0  ;;  %v357_v39 = vsel %vm353_vm3, %v243_v37, -1e+09 }
 0x20b   :  { %v356_v40 = vsel %vm352_vm2, %v217_v38, -1e+09  ;;  %v371_v41 = vsel %vm143_vm1, %v357_v39, -inf }
 0x20c   :  { %372 = vmax.xlane.f32.xlu2 %v371_v41  ;;  %v368_v42 = vsel %vm143_vm1, %v356_v40, -inf }
 0x20d   :  { %369 = vmax.xlane.f32.xlu0 %v368_v42 }
 0x212   :  { %v321_v54 = vpop.f32.mrf.mxu1 }
 0x213   :  { %v360_v55 = vsel %vm352_vm2, %v321_v54, -1e+09 }
 0x214   :  { %366 = vmax.xlane.f32.xlu2 %v365_v44  ;;  %v380_v56 = vsel %vm143_vm1, %v360_v55, -inf }
 0x217   :  { %v295_v45 = vpop.f32.mrf.mxu3 }
 0x218   :  { %v359_v46 = vsel %vm353_vm3, %v295_v45, -1e+09 }
 0x219   :  { %v377_v48 = vsel %vm143_vm1, %v359_v46, -inf }
 0x21b   :  { %897 = vrot.lane.b32.xlu1 %v896_v47, %s1083_s20 }
 0x21c   :  { %v364_v49 = vpop.xlane.xlu2 %363  ;;  %378 = vmax.xlane.f32.xlu2 %v377_v48 }
 0x21d   :  { %v386_v50 = vsub.f32 %v354_v27, %v364_v49 }
 0x21f   :  { %v394_v51 = vmul.f32 1.442695, %v386_v50  ;;  %v906_v50 = vpack.i.bf16 %v1166_v12, %v1155_v10 }
 0x221   :  { %913 = vpow2.f32 %v394_v51 }
 0x227   :  { %v1222_v52 = vpop.eup %913 }
 0x228   :  { %v410_v53 = vsel %vm143_vm1, %v1222_v52, 0.0 }
 0x229   :  { %411 = vadd.xlane.f32.xlu0 %v410_v53 }
 0x231   :  { %381 = vmax.xlane.f32.xlu0 %v380_v56 }
 0x245   :  { %902 = vrot.lane.b32.xlu0 %v901_v57, %s1083_s20 }
 0x265   :  { %v376_v58 = vpop.xlane.xlu1 %375 }
 0x266   :  { %v390_v59 = vsub.f32 %v358_v31, %v376_v58 }
 0x268   :  { %v402_v60 = vmul.f32 1.442695, %v390_v59 }
 0x26a   :  { %915 = vpow2.f32 %v402_v60 }
 0x270   :  { %v1231_v61 = vpop.eup %915 }
 0x271   :  { %v422_v62 = vsel %vm143_vm1, %v1231_v61, 0.0 }
 0x272   :  { %423 = vadd.xlane.f32.xlu2 %v422_v62 }
 0x275   :  { %v385_v63 = vpop.xlane.xlu1 %384 }
 0x276   :  { %v393_v2 = vsub.f32 %v361_v35, %v385_v63 }
 0x278   :  { %v408_v4 = vmul.f32 1.442695, %v393_v2 }
 0x27f   :  { %v373_v0 = vpop.xlane.xlu2 %372 }
 0x280   :  { %v389_v1 = vsub.f32 %v357_v39, %v373_v0  ;;  %v370_v5 = vpop.xlane.xlu0 %369 }
 0x281   :  { %v388_v9 = vsub.f32 %v356_v40, %v370_v5 }
 0x282   :  { %v400_v3 = vmul.f32 1.442695, %v389_v1 }
 0x283   :  { %v398_v17 = vmul.f32 1.442695, %v388_v9 }
 0x284   :  { %917 = vpow2.f32 %v400_v3 }
 0x285   :  { %919 = vpow2.f32 %v408_v4 }
 0x287   :  { %v367_v6 = vpop.xlane.xlu2 %366 }
 0x288   :  { %v387_v7 = vsub.f32 %v355_v43, %v367_v6 }
 0x28a   :  { %v1235_v8 = vpop.eup %917  ;;  %v396_v11 = vmul.f32 1.442695, %v387_v7 }
 0x28b   :  { %v419_v13 = vsel %vm143_vm1, %v1235_v8, 0.0  ;;  %v1239_v21 = vpop.eup %919 }
 0x28c   :  { %921 = vpow2.f32 %v396_v11  ;;  %420 = vadd.xlane.f32.xlu0 %v419_v13  ;;  %v431_v26 = vsel %vm143_vm1, %v1239_v21, 0.0 }
 0x28d   :  { %v898_v14 = vpop.permute.xlu1 %897  ;;  %923 = vpow2.f32 %v398_v17 }
 0x28e   :  { %v900_v18 = vunpack.i.h.bf16 %v898_v14  ;;  %v899_v19 = vunpack.i.l.bf16 %v898_v14 }
 0x28f   :  { %v379_v20 = vpop.xlane.xlu2 %378 }
 0x290   :  { %v391_v22 = vsub.f32 %v359_v46, %v379_v20  ;;  %575 = vmatpush.msrb.mxu3 %v899_v19  ;;  %627 = vmatpush.msrb.mxu1 %v900_v18 }
 0x292   :  { %v1241_v23 = vpop.eup %921  ;;  %v404_v24 = vmul.f32 1.442695, %v391_v22 }
 0x293   :  { %v413_v25 = vsel %vm143_vm1, %v1241_v23, 0.0  ;;  %v1247_v27 = vpop.eup %923 }
 0x294   :  { %925 = vpow2.f32 %v404_v24  ;;  %414 = vadd.xlane.f32.xlu1 %v413_v25  ;;  %432 = vadd.xlane.f32.xlu0 %v431_v26  ;;  %v416_v30 = vsel %vm143_vm1, %v1247_v27, 0.0 }
 0x29a   :  { %v1249_v28 = vpop.eup %925 }
 0x29b   :  { %v425_v29 = vsel %vm143_vm1, %v1249_v28, 0.0 }
 0x29c   :  { %426 = vadd.xlane.f32.xlu2 %v425_v29  ;;  %417 = vadd.xlane.f32.xlu1 %v416_v30  ;;  %v412_v31 = vpop.xlane.xlu0 %411 }
 0x29d   :  { %927 = vrcp.f32 %v412_v31  ;;  %v445_v37 = vand.u32 2147483648, %v412_v31  ;;  %v443_v40 = vand.u32 2147483647, %v412_v31  ;;  %vm439_vm5 = vweird.f32 %v412_v31 }
 0x29f   :  { %v446_v42 = vor.u32 1.1754944e-38, %v445_v37  ;;  %vm444_vm7 = vcmp.eq.f32.partialorder %v443_v40, 8.507059e+37 }
 0x2a3   :  { %v928_v32 = vpop.eup %927 }
 0x2a4   :  { %v435_v33 = vmul.f32 %v928_v32, %v412_v31  ;;  %v382_v34 = vpop.xlane.xlu0 %381  ;;  %vm440_vm4 = vweird.f32 %v928_v32 }
 0x2a5   :  { %v392_v35 = vsub.f32 %v360_v55, %v382_v34  ;;  %vm441_vm6 = vmor %vm439_vm5, %vm440_vm4 }
 0x2a6   :  { %v436_v36 = vsub.f32 1.0, %v435_v33 }
 0x2a7   :  { %v406_v38 = vmul.f32 1.442695, %v392_v35 }
 0x2a8   :  { %v437_v39 = vmul.f32 %v928_v32, %v436_v36  ;;  %684 = vrot.lane.b32.xlu0 %v1174_v15, %s1083_s20 }
 0x2a9   :  { %929 = vpow2.f32 %v406_v38 }
 0x2aa   :  { %v438_v41 = vadd.f32 %v928_v32, %v437_v39 }
 0x2ac   :  { %v442_v43 = vsel %vm441_vm6, %v928_v32, %v438_v41 }
 0x2ad   :  { %v447_v44 = vsel %vm444_vm7, %v446_v42, %v442_v43 }
 0x2ae   :  { %v448_v45 = vmul.f32 %v1222_v52, %v447_v44 }
 0x2af   :  { %v1258_v46 = vpop.eup %929 }
 0x2b0   :  { %872 = vmatmul.msk.f32.vlgmr.msrb.gmra.mxu3 %vm143_vm1, %v448_v45  ;;  %v428_v47 = vsel %vm143_vm1, %v1258_v46, 0.0 }
 0x2b1   :  { %429 = vadd.xlane.f32.xlu2 %v428_v47 }
 0x2b5   :  { %736 = vrot.lane.b32.xlu1 %v1176_v16, %s1083_s20 }
 0x2b7   :  { %v903_v15 = vpop.permute.xlu0 %902 }
 0x2b8   :  { %v905_v48 = vunpack.i.h.bf16 %v903_v15  ;;  %v904_v49 = vunpack.i.l.bf16 %v903_v15 }
 0x2ba   :  { %653 = vmatpush.msrb.mxu2 %v905_v48  ;;  %679 = vmatpush.msra.mxu3 %v904_v49 }
 0x2c9   :  { %907 = vrot.lane.b32.xlu2 %v906_v50, %s1083_s20 }
 0x2e5   :  { %v424_v51 = vpop.xlane.xlu2 %423 }
 0x2e6   :  { %931 = vrcp.f32 %v424_v51  ;;  %v505_v55 = vand.u32 2147483648, %v424_v51  ;;  %v503_v57 = vand.u32 2147483647, %v424_v51  ;;  %vm499_vm9 = vweird.f32 %v424_v51 }
 0x2e8   :  { %v506_v58 = vor.u32 1.1754944e-38, %v505_v55  ;;  %vm504_vm11 = vcmp.eq.f32.partialorder %v503_v57, 8.507059e+37 }
 0x2ec   :  { %v932_v52 = vpop.eup %931 }
 0x2ed   :  { %v495_v53 = vmul.f32 %v932_v52, %v424_v51  ;;  %vm500_vm8 = vweird.f32 %v932_v52 }
 0x2ee   :  { %vm501_vm10 = vmor %vm499_vm9, %vm500_vm8 }
 0x2ef   :  { %v496_v54 = vsub.f32 1.0, %v495_v53 }
 0x2f1   :  { %v497_v56 = vmul.f32 %v932_v52, %v496_v54 }
 0x2f3   :  { %v498_v16 = vadd.f32 %v932_v52, %v497_v56 }
 0x2f5   :  { %v502_v59 = vsel %vm501_vm10, %v932_v52, %v498_v16 }
 0x2f6   :  { %v507_v60 = vsel %vm504_vm11, %v506_v58, %v502_v59 }
 0x2f7   :  { %v508_v10 = vmul.f32 %v1231_v61, %v507_v60 }
 0x2f9   :  { %876 = vmatmul.msk.f32.vlgmr.msra.gmra.mxu3 %vm143_vm1, %v508_v10 }
 0x2ff   :  { %v421_v12 = vpop.xlane.xlu0 %420 }
 0x300   :  { %933 = vrcp.f32 %v421_v12  ;;  %v490_v4 = vand.u32 2147483648, %v421_v12  ;;  %v488_v5 = vand.u32 2147483647, %v421_v12  ;;  %vm484_vm13 = vweird.f32 %v421_v12 }
 0x302   :  { %v491_v9 = vor.u32 1.1754944e-38, %v490_v4  ;;  %vm489_vm15 = vcmp.eq.f32.partialorder %v488_v5, 8.507059e+37 }
 0x306   :  { %v934_v62 = vpop.eup %933 }
 0x307   :  { %v480_v63 = vmul.f32 %v934_v62, %v421_v12  ;;  %v1270_v0 = vpop.xlane.xlu1 %414  ;;  %v433_v1 = vpop.xlane.xlu0 %432  ;;  %vm485_vm12 = vweird.f32 %v934_v62 }
 0x308   :  { %935 = vrcp.f32 %v433_v1  ;;  %vm486_vm14 = vmor %vm484_vm13, %vm485_vm12  ;;  %vm544_vm4 = vweird.f32 %v433_v1  ;;  %v550_v35 = vand.u32 2147483648, %v433_v1  ;;  %v548_v37 = vand.u32 2147483647, %v433_v1 }
 0x309   :  { %v481_v2 = vsub.f32 1.0, %v480_v63  ;;  %937 = vrcp.f32 %v1270_v0  ;;  %v460_v51 = vand.u32 2147483648, %v1270_v0  ;;  %vm454_vm11 = vweird.f32 %v1270_v0 }
 0x30a   :  { %v551_v44 = vor.u32 1.1754944e-38, %v550_v35  ;;  %vm549_vm9 = vcmp.eq.f32.partialorder %v548_v37, 8.507059e+37  ;;  %v458_v52 = vand.u32 2147483647, %v1270_v0 }
 0x30b   :  { %v482_v3 = vmul.f32 %v934_v62, %v481_v2  ;;  %v461_v56 = vor.u32 1.1754944e-38, %v460_v51 }
 0x30c   :  { %vm459_vm13 = vcmp.eq.f32.partialorder %v458_v52, 8.507059e+37 }
 0x30d   :  { %v483_v6 = vadd.f32 %v934_v62, %v482_v3 }
 0x30e   :  { %v936_v7 = vpop.eup %935 }
 0x30f   :  { %v487_v61 = vsel %vm486_vm14, %v934_v62, %v483_v6  ;;  %v418_v11 = vpop.xlane.xlu1 %417  ;;  %v540_v14 = vmul.f32 %v936_v7, %v433_v1  ;;  %v1273_v17 = vpop.xlane.xlu2 %426  ;;  %vm545_vm2 = vweird.f32 %v936_v7 }
 0x310   :  { %v492_v13 = vsel %vm489_vm15, %v491_v9, %v487_v61  ;;  %939 = vrcp.f32 %v418_v11  ;;  %v938_v19 = vpop.eup %937  ;;  %v475_v31 = vand.u32 2147483648, %v418_v11  ;;  %vm1281_vm5 = vmor %vm544_vm4, %vm545_vm2  ;;  %vm469_vm6 = vweird.f32 %v418_v11 }
 0x311   :  { %v493_v18 = vmul.f32 %v1235_v8, %v492_v13  ;;  %v541_v20 = vsub.f32 1.0, %v540_v14  ;;  %941 = vrcp.f32 %v1273_v17  ;;  %v450_v24 = vmul.f32 %v938_v19, %v1270_v0 }
 0x312   :  { %v473_v8 = vand.u32 2147483647, %v418_v11  ;;  %v476_v41 = vor.u32 1.1754944e-38, %v475_v31  ;;  %vm455_vm10 = vweird.f32 %v938_v19  ;;  %v520_v10 = vand.u32 2147483648, %v1273_v17  ;;  %v794_v31 = vld [vmem:[#allocation8] sm:$0xff] }
 0x313   :  { %875 = vmatmul.msk.f32.vlgmr.msrb.gmra.mxu2 %vm143_vm1, %v493_v18  ;;  %v542_v25 = vmul.f32 %v936_v7, %v541_v20  ;;  %v451_v30 = vsub.f32 1.0, %v450_v24  ;;  %vm456_vm12 = vmor %vm454_vm11, %vm455_vm10  ;;  %vm514_vm15 = vweird.f32 %v1273_v17  ;;  %v518_v62 = vand.u32 2147483647, %v1273_v17 }
 0x314   :  { %vm474_vm8 = vcmp.eq.f32.partialorder %v473_v8, 8.507059e+37 }
 0x315   :  { %v543_v33 = vadd.f32 %v936_v7, %v542_v25  ;;  %v452_v39 = vmul.f32 %v938_v19, %v451_v30  ;;  %vm519_vm4 = vcmp.eq.f32.partialorder %v518_v62, 8.507059e+37  ;;  %v795_v30 = vld [vmem:[#allocation8 + $0x8] sm:$0xff] }
 0x316   :  { %v940_v22 = vpop.eup %939 }
 0x317   :  { %v465_v26 = vmul.f32 %v940_v22, %v418_v11  ;;  %v1279_v32 = vpop.eup %941  ;;  %vm470_vm3 = vweird.f32 %v940_v22  ;;  %v547_v42 = vsel %vm1281_vm5, %v936_v7, %v543_v33  ;;  %v453_v15 = vadd.f32 %v938_v19, %v452_v39 }
 0x318   :  { %v510_v40 = vmul.f32 %v1279_v32, %v1273_v17  ;;  %vm471_vm7 = vmor %vm469_vm6, %vm470_vm3  ;;  %v552_v48 = vsel %vm549_vm9, %v551_v44, %v547_v42  ;;  %vm515_vm14 = vweird.f32 %v1279_v32  ;;  %v521_v7 = vor.u32 1.1754944e-38, %v520_v10 }
 0x319   :  { %v466_v29 = vsub.f32 1.0, %v465_v26  ;;  %v553_v54 = vmul.f32 %v1239_v21, %v552_v48  ;;  %v457_v55 = vsel %vm456_vm12, %v938_v19, %v453_v15  ;;  %vm1303_vm2 = vmor %vm514_vm15, %vm515_vm14  ;;  %vm791_vm9 = vcmask 195584  }
 0x31a   :  { %v511_v49 = vsub.f32 1.0, %v510_v40  ;;  %v462_v16 = vsel %vm459_vm13, %v461_v56, %v457_v55  ;;  %v685_v4 = vpop.permute.xlu0 %684 }
 0x31b   :  { %v467_v34 = vmul.f32 %v940_v22, %v466_v29  ;;  %v463_v0 = vmul.f32 %v1241_v23, %v462_v16  ;;  %v796_v29 = vld [vmem:[#allocation8 + $0x10] sm:$0xff] }
 0x31d   :  { %v468_v38 = vadd.f32 %v940_v22, %v467_v34 }
 0x31f   :  { %v472_v43 = vsel %vm471_vm7, %v940_v22, %v468_v38 }
 0x320   :  { %v477_v45 = vsel %vm474_vm8, %v476_v41, %v472_v43  ;;  %vm788_vm8 = vcmask 130048   ;;  %v912_v43 = vld [vmem:[%s1337_s5] ss:$0 sm:$0xff] }
 0x321   :  { %v478_v47 = vmul.f32 %v1247_v27, %v477_v45  ;;  %v512_v27 = vmul.f32 %v1279_v32, %v511_v49 }
 0x323   :  { %874 = vmatmul.msk.f32.vlgmr.msrb.gmra.mxu1 %vm143_vm1, %v478_v47  ;;  %v513_v58 = vadd.f32 %v1279_v32, %v512_v27 }
 0x324   :  { %v430_v50 = vpop.xlane.xlu2 %429 }
 0x325   :  { %943 = vrcp.f32 %v430_v50  ;;  %v535_v2 = vand.u32 2147483648, %v430_v50  ;;  %v517_v3 = vsel %vm1303_vm2, %v1279_v32, %v513_v58  ;;  %v533_v6 = vand.u32 2147483647, %v430_v50 }
 0x326   :  { %vm529_vm5 = vweird.f32 %v430_v50  ;;  %v522_v61 = vsel %vm519_vm4, %v521_v7, %v517_v3 }
 0x327   :  { %v737_v53 = vpop.permute.xlu1 %736  ;;  %v536_v9 = vor.u32 1.1754944e-38, %v535_v2  ;;  %vm534_vm7 = vcmp.eq.f32.partialorder %v533_v6, 8.507059e+37  ;;  %v523_v14 = vmul.f32 %v1249_v28, %v522_v61 }
 0x328   :  { %757 = vmatpush.msra.mxu2 %v737_v53 }
 0x329   :  { %879 = vmatmul.msk.f32.vlgmr.msra.gmra.mxu2 %vm143_vm1, %v553_v54 }
 0x32b   :  { %v944_v57 = vpop.eup %943 }
 0x32c   :  { %v525_v59 = vmul.f32 %v944_v57, %v430_v50  ;;  %v908_v60 = vpop.permute.xlu2 %907  ;;  %vm530_vm3 = vweird.f32 %v944_v57 }
 0x32d   :  { %v910_v12 = vunpack.i.h.bf16 %v908_v60  ;;  %v909_v21 = vunpack.i.l.bf16 %v908_v60  ;;  %vm531_vm6 = vmor %vm529_vm5, %vm530_vm3 }
 0x32e   :  { %v526_v63 = vsub.f32 1.0, %v525_v59 }
 0x32f   :  { %601 = vmatpush.msra.mxu0 %v909_v21  ;;  %731 = vmatpush.msra.mxu1 %v910_v12 }
 0x330   :  { %v527_v5 = vmul.f32 %v944_v57, %v526_v63  ;;  %873 = vmatmul.msk.f32.vlgmr.msra.gmra.mxu0 %vm143_vm1, %v463_v0 }
 0x331   :  { %705 = vmatpush.msrb.mxu0 %v685_v4 }
 0x332   :  { %v528_v23 = vadd.f32 %v944_v57, %v527_v5 }
 0x333   :  { %v577_v18 = vpop.f32.mrf.mxu3 }
 0x334   :  { %v532_v11 = vsel %vm531_vm6, %v944_v57, %v528_v23 }
 0x335   :  { %v537_v13 = vsel %vm534_vm7, %v536_v9, %v532_v11 }
 0x336   :  { %v538_v17 = vmul.f32 %v1258_v46, %v537_v13  ;;  %v797_v46 = vld [vmem:[#allocation8 + $0x18] sm:$0xff] }
 0x337   :  { %820 = vmatpush.msrb.mxu3 %v797_v46 }
 0x338   :  { %877 = vmatmul.msk.f32.vlgmr.msrb.gmra.mxu0 %vm143_vm1, %v523_v14  ;;  %878 = vmatmul.msk.f32.vlgmr.msra.gmra.mxu1 %vm143_vm1, %v538_v17 }
 0x339   :  { %821 = vmatpush.msrb.mxu3 %v796_v29 }
 0x33b   :  { %822 = vmatpush.msrb.mxu3 %v795_v30 }
 0x33d   :  { %823 = vmatpush.msrb.mxu3 %v794_v31 }
 0x37c   :  { %v681_v19 = vpop.f32.mrf.mxu3 }
 0x37d   :  { %772 = vrot.lane.b32.xlu0 %v681_v19, %s1084_s21 }
 0x396   :  { %v655_v22 = vpop.f32.mrf.mxu2 }
 0x3a0   :  { %v629_v20 = vpop.f32.mrf.mxu1 }
 0x3a1   :  { %764 = vrot.lane.b32.xlu1 %v629_v20, %s1075_s30 }
 0x3a9   :  { %766 = vrot.lane.b32.xlu1 %v655_v22, %s1075_s30 }
 0x3ac   :  { %v759_v28 = vpop.f32.mrf.mxu2 }
 0x3ad   :  { %v603_v24 = vpop.f32.mrf.mxu0 }
 0x3b5   :  { %v707_v25 = vpop.f32.mrf.mxu0  ;;  %v733_v26 = vpop.f32.mrf.mxu1 }
 0x3b6   :  { %780 = vrot.lane.b32.xlu2 %v733_v26, %s1085_s22  ;;  %774 = vrot.lane.b32.xlu0 %v707_v25, %s1084_s21 }
 0x3be   :  { %782 = vrot.lane.b32.xlu2 %v759_v28, %s1085_s22 }
 0x3ef   :  { %v773_v33 = vpop.permute.xlu0 %772 }
 0x410   :  { %v781_v8 = vpop.permute.xlu2 %780 }
 0x413   :  { %v765_v32 = vpop.permute.xlu1 %764 }
 0x414   :  { %v786_v34 = vsel %vm143_vm1, %v577_v18, %v765_v32 }
 0x415   :  { %v789_v35 = vsel %vm788_vm8, %v786_v34, %v773_v33 }
 0x416   :  { %v792_v36 = vsel %vm791_vm9, %v789_v35, %v781_v8 }
 0x417   :  { %880 = vmatmul.msk.f32.vlgmr.msrb.gmra.mxu3 %vm97_vm0, %v792_v36 }
 0x418   :  { %v783_v40 = vpop.permute.xlu2 %782 }
 0x41b   :  { %v767_v37 = vpop.permute.xlu1 %766 }
 0x41c   :  { %v787_v38 = vsel %vm143_vm1, %v603_v24, %v767_v37 }
 0x428   :  { %v775_v39 = vpop.permute.xlu0 %774 }
 0x429   :  { %v790_v41 = vsel %vm788_vm8, %v787_v38, %v775_v39 }
 0x42a   :  { %v793_v42 = vsel %vm791_vm9, %v790_v41, %v783_v40 }
 0x42b   :  { %881 = vmatmul.msk.f32.gmra.mxu3 %vm97_vm0, %v793_v42 }
 0x49a   :  { %v825_v44 = vpop.f32.mrf.mxu3 }
 0x49b   :  { %v826_v45 = vadd.f32 %v912_v43, %v825_v44 }
 0x49d   :  { %831 = vst.msk [vmem:[#allocation10] sm:$0xff] %vm97_vm0, %v826_v45 }
 0x4ae   :  { %v828_v47 = vpop.f32.mrf.mxu3 }
 0x4af   :  { %v829_v15 = vadd.f32 %v912_v43, %v828_v47 }
 0x4b1   :  { %832 = vst.msk [vmem:[#allocation10 + $0x8] sm:$0xff] %vm97_vm0, %v829_v15 }
 0x4b2   :  { %845 = dma.vmem_to_hbm [thread:$0]  %s838_s26, 256, %s840_s7, [#allocation4], %s1074_s29, %s1074_s29, %s1075_s30  }
 0x4b3   :  { %1071 = dma.done.wait [#allocation4], 256  }
 0x4b4   :  { %1072 = vsyncadd [#allocation4], 4294967040 }
 0x4b5   :  { %850 = vsyncpa [#allocation3], 1 }
 0x4b6   :  { %851 = vsyncpa [#allocation6], 1 }
 0x4b7   :  { %852 = vsyncpa [#allocation9], 1 }
 0x4b8   :  { %853 = vsyncpa [#allocation4], 1 }

</bundles_post_ra>
